<compile_context>
chip_gen: v6e
topology: v6e:2x2x1
jax: 0.10.0
libtpu: 0.0.40
codegen_flags: <defaults>
</compile_context>

<pallas_src>
import jax
import jax.numpy as jnp
import numpy as np
from jax.experimental import pallas as pl
from jax.experimental.pallas import tpu as pltpu

# ---------------- synthetic config (mirrors `args` / `args.model`) ----------
N_USERS = 10
N_ITEMS = 12
FEAT_DIM = (5, 6)            # args.feat_dim : bits of each extra feature field
HIDDEN = 16                  # args.model.hidden_dim
ATTN_DIM = 8                 # args.model.attention_dim
CHANNEL_LIST = [4]           # args.model.channel_list  (single conv layer)
KERNEL_SIZE = 3              # args.model.kernel_size
STRIDE = 1                   # args.model.stride  (folding assumes stride=1)
BATCH = 1024                 # demo batch
TILE_B = 512                 # batch tile -> grid=(2,): fills vregs, both TCs on v7x

NF = len(FEAT_DIM)           # number of multi-hot feature fields
MB = max(FEAT_DIM)           # padded bits per field
NROWS = NF + 2               # user + item + feature fields
RH = NROWS * HIDDEN
CIN = NROWS * (NROWS - 1) // 2                  # pairwise-interaction channels
COUT = CHANNEL_LIST[-1]
OUT_HW = (HIDDEN - KERNEL_SIZE) // STRIDE + 1
assert STRIDE == 1, "conv+fc folding written for stride=1 valid conv"

# packed per-example slab layout (feature axis -> sublanes, batch -> lanes)
COL_U2I2 = 0                          # [0 : 2H)   second-order user|item rows
COL_MH = 2 * HIDDEN                   # [32 : 44)  flattened multi-hot bits
COL_FIRST = COL_MH + NF * MB          # [44]       u1 + i1 + bias + conv/fc const
SLAB_F = ((COL_FIRST + 1 + 7) // 8) * 8           # 48 (sublane aligned)

# combined-matmul output layout: [0]=first, [1:1+NF]=denoms, [8:8+NF*H]=numerators
NUM_OFF = 8
DPAD = NUM_OFF + NF * HIDDEN          # 40
assert 1 + NF <= NUM_OFF

# bit masks for vectorized multi-hot encoding (constant, per-field padded)
_BIT_MASK = np.zeros((NF, MB), np.int32)
for _f, _bits in enumerate(FEAT_DIM):
    _BIT_MASK[_f, :_bits] = 2 ** np.arange(_bits - 1, -1, -1)


# ------------------------------- Pallas kernel ------------------------------
def _lcfm_kernel(slab_ref, mbigT_ref, wblkT_ref, out_ref):
    tb = slab_ref.shape[1]
    slab = slab_ref[...]                                     # [SLAB_F, TB]

    # One MXU push: first-order logit (incl. bias + folded conv/fc constants),
    # per-field softmax denominators and pooled-row numerators.
    prod = jnp.dot(mbigT_ref[...], slab,
                   preferred_element_type=jnp.float32)       # [DPAD, TB]

    first = prod[0:1, :]                                     # [1, TB]
    num = prod[NUM_OFF:NUM_OFF + NF * HIDDEN, :]             # [NF*H, TB]

    # Attention softmax with constant (pack-time) scores:
    #   attn = mh*exp_s / rowsum(mh*exp_s)   ->   pooled_f = num_f / denom_f
    # NOTE: requires >= 1 set bit per field (same 0/0 behaviour as torch ref).
    recips = [jnp.broadcast_to(
                  pl.reciprocal(prod[1 + f:2 + f, :], approx=True),
                  (HIDDEN, tb))
              for f in range(NF)]
    pooled = num * jnp.concatenate(recips, axis=0)           # [NF*H, TB]

    # Folded pairwise-outer-product image + Conv2d + fc:
    #   quad[b] = R[b] @ Wblk @ R[b]^T  with R = [u2 | i2 | pooled_0 | pooled_1]
    rT = jnp.concatenate([slab[0:2 * HIDDEN, :], pooled], axis=0)   # [RH, TB]
    wr = jnp.dot(wblkT_ref[...], rT, preferred_element_type=jnp.float32)
    quad = jnp.sum(wr * rT, axis=0, keepdims=True)           # [1, TB]

    logit = first + quad
    # Numerically-stable sigmoid; exact divide keeps the f32 check tight
    # (approx=True is a further free knob once VPU-bound at very large TB).
    out_ref[...] = 1.0 / (1.0 + jnp.exp(-logit))             # lane-dense [1,TB] store


# ------------------------------ parameter init ------------------------------
def init_params(key):
    ks = iter(jax.random.split(key, 32))

    def nrm(shape, scale=0.1):
        return jax.random.normal(next(ks), shape, jnp.float32) * scale

    return {
        'bias': jnp.zeros((), jnp.float32),
        'first_user_W': nrm((N_USERS, 1)),
        'first_item_W': nrm((N_ITEMS, 1)),
        'first_feat_W': [nrm((1, b)) for b in FEAT_DIM],
        'second_user_W': nrm((N_USERS, HIDDEN)),
        'second_item_W': nrm((N_ITEMS, HIDDEN)),
        'second_feat_W': [nrm((HIDDEN, b)) for b in FEAT_DIM],
        'attn_W1': [nrm((ATTN_DIM, HIDDEN)) for _ in FEAT_DIM],
        'attn_b1': [nrm((ATTN_DIM,)) for _ in FEAT_DIM],
        'attn_W2': [nrm((1, ATTN_DIM)) for _ in FEAT_DIM],
        'conv_W': nrm((COUT, CIN, KERNEL_SIZE, KERNEL_SIZE)),
        'conv_b': nrm((COUT,)),
        'fc_W': nrm((1, COUT * OUT_HW * OUT_HW)),
        'fc_b': nrm((1,)),
    }


# ------------------------------ parameter packing ----------------------------
def pack_params(params):
    """One-time folding: attention scores -> constants, conv+fc -> bilinear
    block matrix, per-field weights -> one combined matmul operand."""
    p = jax.tree.map(np.asarray, params)

    w1p = np.zeros((NF, MB), np.float32)
    w2p = np.zeros((NF, MB, HIDDEN), np.float32)
    exps = np.zeros((NF, MB), np.float32)
    for f, bits in enumerate(FEAT_DIM):
        w1p[f, :bits] = p['first_feat_W'][f][0]
        w2p[f, :bits, :] = p['second_feat_W'][f].T
        # constant attention scores: c[m] = W2 @ tanh(W1 @ w2[:, m] + b1)
        hid = np.tanh(w2p[f, :bits] @ p['attn_W1'][f].T + p['attn_b1'][f])
        c = hid @ p['attn_W2'][f][0]
        exps[f, :bits] = np.exp(c - c.max())

    # fold Conv2d (OIHW, valid, stride 1) + fc into per-pair bilinear matrices
    convw = np.transpose(p['conv_W'], (2, 3, 1, 0))                      # [K,K,CIN,COUT]
    fcw = np.transpose(p['fc_W'][0].reshape(COUT, OUT_HW, OUT_HW),
                       (1, 2, 0))                                        # [OH,OW,COUT]
    w_eff = np.zeros((CIN, HIDDEN, HIDDEN), np.float32)
    for kh in range(KERNEL_SIZE):
        for kw in range(KERNEL_SIZE):
            contrib = np.einsum('co,pqo->cpq', convw[kh, kw], fcw)
            w_eff[:, kh:kh + OUT_HW, kw:kw + OUT_HW] += contrib
    wblk = np.zeros((RH, RH), np.float32)
    pairs = [(i, j) for i in range(NROWS) for j in range(i + 1, NROWS)]
    for c_idx, (i, j) in enumerate(pairs):
        wblk[i * HIDDEN:(i + 1) * HIDDEN, j * HIDDEN:(j + 1) * HIDDEN] = w_eff[c_idx]

    base = float(p['bias'] + p['fc_b'][0]
                 + np.sum(fcw * p['conv_b'][None, None, :]))

    # single combined matmul operand (transposed: rows = outputs, cols = slab)
    mbigT = np.zeros((DPAD, SLAB_F), np.float32)
    mbigT[0, COL_FIRST] = 1.0                       # pass through u1+i1+base
    for f in range(NF):
        cs = slice(COL_MH + f * MB, COL_MH + (f + 1) * MB)
        mbigT[0, cs] = w1p[f]                       # first-order feature weights
        mbigT[1 + f, cs] = exps[f]                  # softmax denominator
        mbigT[NUM_OFF + f * HIDDEN:NUM_OFF + (f + 1) * HIDDEN, cs] = \
            (exps[f][:, None] * w2p[f]).T           # pooled-row numerators

    return {
        'first_user_W': params['first_user_W'],
        'first_item_W': params['first_item_W'],
        'second_user_W': params['second_user_W'],
        'second_item_W': params['second_item_W'],
        'base': jnp.asarray(base, jnp.float32),
        'mbigT': jnp.asarray(mbigT),
        'wblkT': jnp.asarray(np.ascontiguousarray(wblk.T)),
    }


# ------------------------------ forward (kernel) -----------------------------
@jax.jit
def lcfm_forward(packed, x):
    B = x.shape[0]
    tb = TILE_B if B % TILE_B == 0 else B           # demo: 1024/512 -> grid=(2,)

    # multi-hot encode (CFM "binary": unnormalized), vectorized, padded
    mh = (jnp.bitwise_and(x[:, 2:2 + NF, None],
                          jnp.asarray(_BIT_MASK)[None]) != 0)
    mh = mh.reshape(B, NF * MB).astype(jnp.float32)

    # embedding gathers (glue); bias + folded conv/fc constant added here
    first01 = (packed['first_user_W'][x[:, 0], 0]
               + packed['first_item_W'][x[:, 1], 0]
               + packed['base'])                                        # [B]
    u2i2 = jnp.concatenate([packed['second_user_W'][x[:, 0]],
                            packed['second_item_W'][x[:, 1]]], axis=1)  # [B, 2H]

    # one lane-dense slab, transposed so the batch sits on lanes in-kernel
    slab = jnp.concatenate(
        [u2i2, mh, first01[:, None],
         jnp.zeros((B, SLAB_F - COL_FIRST - 1), jnp.float32)], axis=1)  # [B, SLAB_F]
    slabT = slab.T                                                      # [SLAB_F, B]

    out = pl.pallas_call(
        _lcfm_kernel,
        out_shape=jax.ShapeDtypeStruct((1, B), jnp.float32),
        grid=(B // tb,),
        in_specs=[
            pl.BlockSpec((SLAB_F, tb), lambda i: (0, i)),
            pl.BlockSpec((DPAD, SLAB_F), lambda i: (0, 0)),
            pl.BlockSpec((RH, RH), lambda i: (0, 0)),
        ],
        out_specs=pl.BlockSpec((1, tb), lambda i: (0, i)),
        compiler_params=pltpu.CompilerParams(
            dimension_semantics=("parallel",)),   # shards batch tiles across TCs
    )(slabT, packed['mbigT'], packed['wblkT'])
    return out[0]


# ------------------------ pure-JAX NCHW reference ----------------------------
def multi_hot(vals, bits):
    mask = 2 ** jnp.arange(bits - 1, -1, -1, dtype=jnp.int32)
    return (jnp.bitwise_and(vals[:, None].astype(jnp.int32),
                            mask[None, :]) != 0).astype(jnp.float32)


def jax_reference(params, x):
    B = x.shape[0]
    u1 = params['first_user_W'][x[:, 0], 0]
    i1 = params['first_item_W'][x[:, 1], 0]
    first = u1 + i1
    for f, bits in enumerate(FEAT_DIM):
        mh = multi_hot(x[:, f + 2], bits)
        first = first + mh @ params['first_feat_W'][f][0]
    out = params['bias'] + first

    rows = [params['second_user_W'][x[:, 0]], params['second_item_W'][x[:, 1]]]
    for f, bits in enumerate(FEAT_DIM):
        mh = multi_hot(x[:, f + 2], bits)
        me = mh[:, :, None] * params['second_feat_W'][f].T[None]
        hid = jnp.tanh(me @ params['attn_W1'][f].T + params['attn_b1'][f])
        score = (hid @ params['attn_W2'][f].T)[..., 0]
        score = jnp.where(mh > 0, score, -jnp.inf)
        attn = jax.nn.softmax(score, axis=1)
        rows.append(jnp.sum(me * attn[:, :, None], axis=1))

    F = len(rows)
    pairs = [(i, j) for i in range(F) for j in range(i + 1, F)]
    image = jnp.stack([rows[i][:, :, None] * rows[j][:, None, :]
                       for i, j in pairs], axis=1)                   # [B,C,H,H]
    conv = jax.lax.conv_general_dilated(
        image, params['conv_W'], (STRIDE, STRIDE), 'VALID',
        dimension_numbers=('NCHW', 'OIHW', 'NCHW'))
    conv = conv + params['conv_b'][None, :, None, None]
    out = out + conv.reshape(B, -1) @ params['fc_W'][0] + params['fc_b'][0]
    return jnp.exp(out) / (1.0 + jnp.exp(out))


if __name__ == "__main__":
    key = jax.random.PRNGKey(0)
    pkey, xkey = jax.random.split(key)
    params = init_params(pkey)
    packed = jax.tree.map(jax.block_until_ready, pack_params(params))  # once

    ku, ki, kf0, kf1 = jax.random.split(xkey, 4)
    # x: [B, 2 + NF] int32 -> (user id, item id, field values >= 1 so every
    # multi-hot row has at least one set bit, matching the torch data contract)
    x = jnp.stack([
        jax.random.randint(ku, (BATCH,), 0, N_USERS),
        jax.random.randint(ki, (BATCH,), 0, N_ITEMS),
        jax.random.randint(kf0, (BATCH,), 1, 2 ** FEAT_DIM[0]),
        jax.random.randint(kf1, (BATCH,), 1, 2 ** FEAT_DIM[1]),
    ], axis=1).astype(jnp.int32)

    out = jax.block_until_ready(lcfm_forward(packed, x))
    ref = jax.block_until_ready(jax_reference(params, x))
    assert out.shape == (BATCH,)
    # tolerance covers the approx EUP reciprocal in the softmax denominators
    np.testing.assert_allclose(np.asarray(out), np.asarray(ref),
                               rtol=2e-3, atol=2e-4)
    print("KERNEL_OK")
</pallas_src>

<mosaic_0001>
module attributes {stable_mosaic.version = 11 : i64} {
  func.func @_lcfm_kernel(%arg0: i32, %arg1: memref<48x512xf32, #tpu.memory_space<vmem>>, %arg2: memref<40x48xf32, #tpu.memory_space<vmem>>, %arg3: memref<64x64xf32, #tpu.memory_space<vmem>>, %arg4: memref<1x512xf32, #tpu.memory_space<vmem>>) attributes {dimension_semantics = [#tpu.dimension_semantics<parallel>], iteration_bounds = array<i64: 2>, scalar_prefetch = 0 : i64, scratch_operands = 0 : i64, tpu.core_type = #tpu.core_type<tc>, window_params = [{transform_indices = @transform_0, window_bounds = array<i64: 48, 512>}, {pipeline_mode = #tpu.pipeline_mode<synchronous>, transform_indices = @transform_1, window_bounds = array<i64: 40, 48>}, {pipeline_mode = #tpu.pipeline_mode<synchronous>, transform_indices = @transform_2, window_bounds = array<i64: 64, 64>}, {transform_indices = @transform_3, window_bounds = array<i64: 1, 512>}]} {
    %c0 = arith.constant 0 : index
    %c0_0 = arith.constant 0 : index
    %0 = vector.load %arg1[%c0, %c0_0] : memref<48x512xf32, #tpu.memory_space<vmem>>, vector<48x512xf32>
    %c0_1 = arith.constant 0 : index
    %c0_2 = arith.constant 0 : index
    %1 = vector.load %arg2[%c0_1, %c0_2] : memref<40x48xf32, #tpu.memory_space<vmem>>, vector<40x48xf32>
    %cst = arith.constant dense<0.000000e+00> : vector<40x512xf32>
    %2 = tpu.matmul %1, %0, %cst {dimension_numbers = #tpu.dot_dimension_numbers<[1], [0], [0], [1], [0, 0, 1, 1], [], []>} : vector<40x48xf32>, vector<48x512xf32>, vector<40x512xf32> -> vector<40x512xf32>
    %3 = vector.extract_strided_slice %2 {offsets = [0, 0], sizes = [1, 512], strides = [1, 1]} : vector<40x512xf32> to vector<1x512xf32>
    %4 = vector.extract_strided_slice %2 {offsets = [8, 0], sizes = [32, 512], strides = [1, 1]} : vector<40x512xf32> to vector<32x512xf32>
    %5 = vector.extract_strided_slice %2 {offsets = [1, 0], sizes = [1, 512], strides = [1, 1]} : vector<40x512xf32> to vector<1x512xf32>
    %6 = tpu.reciprocal %5 {approx = true} : vector<1x512xf32> -> vector<1x512xf32>
    %7 = vector.shape_cast %6 : vector<1x512xf32> to vector<1x512xf32>
    %8 = vector.broadcast %7 : vector<1x512xf32> to vector<16x512xf32>
    %9 = vector.extract_strided_slice %2 {offsets = [2, 0], sizes = [1, 512], strides = [1, 1]} : vector<40x512xf32> to vector<1x512xf32>
    %10 = tpu.reciprocal %9 {approx = true} : vector<1x512xf32> -> vector<1x512xf32>
    %11 = vector.shape_cast %10 : vector<1x512xf32> to vector<1x512xf32>
    %12 = vector.broadcast %11 : vector<1x512xf32> to vector<16x512xf32>
    %13 = tpu.concatenate %8, %12 in 0 : vector<16x512xf32>, vector<16x512xf32> -> vector<32x512xf32>
    %14 = arith.mulf %4, %13 : vector<32x512xf32>
    %15 = vector.extract_strided_slice %0 {offsets = [0, 0], sizes = [32, 512], strides = [1, 1]} : vector<48x512xf32> to vector<32x512xf32>
    %16 = tpu.concatenate %15, %14 in 0 : vector<32x512xf32>, vector<32x512xf32> -> vector<64x512xf32>
    %c0_3 = arith.constant 0 : index
    %c0_4 = arith.constant 0 : index
    %17 = vector.load %arg3[%c0_3, %c0_4] : memref<64x64xf32, #tpu.memory_space<vmem>>, vector<64x64xf32>
    %cst_5 = arith.constant dense<0.000000e+00> : vector<64x512xf32>
    %18 = tpu.matmul %17, %16, %cst_5 {dimension_numbers = #tpu.dot_dimension_numbers<[1], [0], [0], [1], [0, 0, 1, 1], [], []>} : vector<64x64xf32>, vector<64x512xf32>, vector<64x512xf32> -> vector<64x512xf32>
    %19 = arith.mulf %18, %16 : vector<64x512xf32>
    %cst_6 = arith.constant dense<0.000000e+00> : vector<512xf32>
    %20 = vector.multi_reduction <add>, %19, %cst_6 [0] : vector<64x512xf32> to vector<512xf32>
    %21 = vector.shape_cast %20 : vector<512xf32> to vector<1x512xf32>
    %22 = arith.addf %3, %21 : vector<1x512xf32>
    %cst_7 = arith.constant 0.000000e+00 : f32
    %23 = vector.broadcast %cst_7 : f32 to vector<1x512xf32>
    %24 = arith.subf %23, %22 : vector<1x512xf32>
    %25 = math.exp %24 : vector<1x512xf32>
    %cst_8 = arith.constant 1.000000e+00 : f32
    %26 = vector.broadcast %cst_8 : f32 to vector<1x512xf32>
    %27 = arith.addf %26, %25 : vector<1x512xf32>
    %cst_9 = arith.constant 1.000000e+00 : f32
    %28 = vector.broadcast %cst_9 : f32 to vector<1x512xf32>
    %29 = arith.divf %28, %27 : vector<1x512xf32>
    %c0_10 = arith.constant 0 : index
    %c0_11 = arith.constant 0 : index
    %30 = vector.load %arg4[%c0_10, %c0_11] : memref<1x512xf32, #tpu.memory_space<vmem>>, vector<1x512xf32>
    tpu.vector_store %arg4[%c0_10, %c0_11], %29 {strides = array<i32>} : memref<1x512xf32, #tpu.memory_space<vmem>>, vector<1x512xf32>,
    return
  }
  func.func @transform_0(%arg0: i32) -> (i32, i32) {
    %c0_i32 = arith.constant 0 : i32
    %c0_i32_0 = arith.constant 0 : i32
    return %c0_i32, %arg0 : i32, i32
  }
  func.func @transform_1(%arg0: i32) -> (i32, i32) {
    %c0_i32 = arith.constant 0 : i32
    %c0_i32_0 = arith.constant 0 : i32
    %c0_i32_1 = arith.constant 0 : i32
    return %c0_i32, %c0_i32_0 : i32, i32
  }
  func.func @transform_2(%arg0: i32) -> (i32, i32) {
    %c0_i32 = arith.constant 0 : i32
    %c0_i32_0 = arith.constant 0 : i32
    %c0_i32_1 = arith.constant 0 : i32
    return %c0_i32, %c0_i32_0 : i32, i32
  }
  func.func @transform_3(%arg0: i32) -> (i32, i32) {
    %c0_i32 = arith.constant 0 : i32
    %c0_i32_0 = arith.constant 0 : i32
    return %c0_i32, %arg0 : i32, i32
  }
}

</mosaic_0001>

<bundles_post_ra>
// kernel: lcfm_forward.1
= control target key start
LH: loop header
LB: loop body
LE: loop exit
PB: predicated region body
PF: predicated region fallthrough
CT: control target
= control target key end

     0   :  { %8 = vsyncpa [#allocation4], 0  ;;  %s1634_s0 = inlined_call_operand.vmem [shape: f32[48,1024], index: 0, kind: input, shape index: {}]   ;;  %s1635_s1 = inlined_call_operand.vmem [shape: f32[40,48], index: 1, kind: input, shape index: {}]   ;;  %s1636_s2 = inlined_call_operand.vmem [shape: f32[64,64], index: 2, kind: input, shape index: {}]   ;;  %s1637_s3 = inlined_call_operand.hbm [shape: f32[1,1024], index: 3, kind: output, shape index: {}]  }
   0x1   :  { %10 = vsyncpa [#allocation4 + $0x1], 0  ;;  %s1201_s12 = smov 0   ;;  %s1203_s13 = smov 0  }
   0x2   :  { %s1205_s14 = smov 0   ;;  %s1207_s15 = smov 0  }
   0x3 LB: > { %s1008_s16 = sadd.s32 4294967295, %s1176_s15   ;;  %s1009_s17 = sadd.s32 4294967294, %s1176_s15   ;;  %s1176_s15 = sphi %s1207_s15, %s1647_s15   ;;  %s1172_s14 = sphi %s1205_s14, %s1646_s14   ;;  %s1168_s13 = sphi %s1203_s13, %s1645_s13   ;;  %s1164_s12 = sphi %s1201_s12, %s1644_s12  }
   0x4   : > { %s1224_s18 = sadd.s32 1, %s1176_s15   ;;  %s23_s19 = sadd.s32 1, %s1172_s14 }
   0x5   : > { %s20_s20 = ssub.s32 %s1176_s15, %s1224_s18  ;;  %p30_p0 = scmp.ne.s32.totalorder %s1172_s14, %s1168_s13 }
   0x6   : > { %p21_p1 = scmp.eq.s32.totalorder %s20_s20, 0  ;;  %p31_p2 = scmp.eq.s32.totalorder %s1176_s15, 0 }
   0x7   : > { %p102_p3 = scmp.eq.s32.totalorder %s1008_s16, 1  ;;  %p107_p4 = scmp.ne.s32.totalorder %s1168_s13, %s1164_s12 }
   0x8   : > { %s1237_s21 = scalar_select %p21_p1, %s1172_s14, %s23_s19  }
   0x9   : > { %p32_p5 = por %p31_p2, %p30_p0  ;;  %p1239_p6 = por %p102_p3, %p30_p0 }
   0xa   : > { %p108_p7 = scmp.eq.s32.totalorder %s1009_s17, 1  ;;  %p1639_p9 = scmp.ge.s32.totalorder %s1176_s15, 2 }
   0xc   : > { %p1243_p8 = por %p108_p7, %p107_p4  ;;  %130 = sbr.rel (%p1639_p9) target bundleno = 34 (0x22), region = 24 }
  0x11   : > { %133 = sbr.rel (!%p32_p5) target bundleno = 34 (0x22), region = 28  ;;  %s135_s24 = sand.u32 (%p32_p5), 1, %s1172_s14  }
  0x12   : > { %s1047_s25 = sshll.u32 (%p32_p5), %s1176_s15, 5  ;;  %s1049_s26 = smul.u32 (%p32_p5), 192, %s135_s24 }
  0x13   : > { %s1255_s29 = scalar_lea.vmem (%p32_p5), %s1634_s0, %s1047_s25 }
  0x14   : > { %v153_v0 = vld [vmem:[%s1255_s29] sm:$0xff] (%p32_p5)  ;;  %v155_v1 = vld [vmem:[%s1255_s29 + $0x8] sm:$0xff] (%p32_p5)  ;;  %v157_v2 = vld [vmem:[%s1255_s29 + $0x10] sm:$0xff] (%p32_p5)  ;;  %s1263_s30 = scalar_lea.vmem (%p32_p5), [#allocation2], %s1049_s26 }
  0x15   : > { %v159_v3 = vld [vmem:[%s1255_s29 + $0x18] sm:$0xff] (%p32_p5)  ;;  %v161_v4 = vld [vmem:[%s1255_s29 + $0x40] sm:$0xff] (%p32_p5)  ;;  %v163_v5 = vld [vmem:[%s1255_s29 + $0x48] sm:$0xff] (%p32_p5)  ;;  %154 = vst [vmem:[%s1263_s30] sm:$0xff] (%p32_p5), %v153_v0 }
  0x16   : > { %156 = vst [vmem:[%s1263_s30 + $0x8] sm:$0xff] %v155_v1  ;;  %158 = vst [vmem:[%s1263_s30 + $0x10] sm:$0xff] %v157_v2  ;;  %v165_v6 = vld [vmem:[%s1255_s29 + $0x50] sm:$0xff]  ;;  %v167_v7 = vld [vmem:[%s1255_s29 + $0x58] sm:$0xff] }
  0x17   : > { %160 = vst [vmem:[%s1263_s30 + $0x18] sm:$0xff] %v159_v3  ;;  %162 = vst [vmem:[%s1263_s30 + $0x20] sm:$0xff] %v161_v4  ;;  %v169_v8 = vld [vmem:[%s1255_s29 + $0x80] sm:$0xff]  ;;  %v171_v9 = vld [vmem:[%s1255_s29 + $0x88] sm:$0xff] }
  0x18   : > { %164 = vst [vmem:[%s1263_s30 + $0x28] sm:$0xff] %v163_v5  ;;  %166 = vst [vmem:[%s1263_s30 + $0x30] sm:$0xff] %v165_v6  ;;  %v173_v10 = vld [vmem:[%s1255_s29 + $0x90] sm:$0xff]  ;;  %v175_v11 = vld [vmem:[%s1255_s29 + $0x98] sm:$0xff] }
  0x19   : > { %168 = vst [vmem:[%s1263_s30 + $0x38] sm:$0xff] %v167_v7  ;;  %170 = vst [vmem:[%s1263_s30 + $0x40] sm:$0xff] %v169_v8  ;;  %v177_v12 = vld [vmem:[%s1255_s29 + $0xc0] sm:$0xff]  ;;  %v179_v13 = vld [vmem:[%s1255_s29 + $0xc8] sm:$0xff] }
  0x1a   : > { %172 = vst [vmem:[%s1263_s30 + $0x48] sm:$0xff] %v171_v9  ;;  %174 = vst [vmem:[%s1263_s30 + $0x50] sm:$0xff] %v173_v10  ;;  %v181_v14 = vld [vmem:[%s1255_s29 + $0xd0] sm:$0xff]  ;;  %v183_v15 = vld [vmem:[%s1255_s29 + $0xd8] sm:$0xff] }
  0x1b   : > { %176 = vst [vmem:[%s1263_s30 + $0x58] sm:$0xff] %v175_v11  ;;  %178 = vst [vmem:[%s1263_s30 + $0x60] sm:$0xff] %v177_v12  ;;  %v185_v16 = vld [vmem:[%s1255_s29 + $0x100] sm:$0xff]  ;;  %v187_v17 = vld [vmem:[%s1255_s29 + $0x108] sm:$0xff] }
  0x1c   : > { %180 = vst [vmem:[%s1263_s30 + $0x68] sm:$0xff] %v179_v13  ;;  %182 = vst [vmem:[%s1263_s30 + $0x70] sm:$0xff] %v181_v14  ;;  %v189_v18 = vld [vmem:[%s1255_s29 + $0x110] sm:$0xff]  ;;  %v191_v19 = vld [vmem:[%s1255_s29 + $0x118] sm:$0xff] }
  0x1d   : > { %184 = vst [vmem:[%s1263_s30 + $0x78] sm:$0xff] %v183_v15  ;;  %186 = vst [vmem:[%s1263_s30 + $0x80] sm:$0xff] %v185_v16  ;;  %v193_v20 = vld [vmem:[%s1255_s29 + $0x140] sm:$0xff]  ;;  %v195_v21 = vld [vmem:[%s1255_s29 + $0x148] sm:$0xff] }
  0x1e   : > { %188 = vst [vmem:[%s1263_s30 + $0x88] sm:$0xff] %v187_v17  ;;  %190 = vst [vmem:[%s1263_s30 + $0x90] sm:$0xff] %v189_v18  ;;  %v197_v22 = vld [vmem:[%s1255_s29 + $0x150] sm:$0xff]  ;;  %v199_v23 = vld [vmem:[%s1255_s29 + $0x158] sm:$0xff] }
  0x1f   : > { %192 = vst [vmem:[%s1263_s30 + $0x98] sm:$0xff] %v191_v19  ;;  %194 = vst [vmem:[%s1263_s30 + $0xa0] sm:$0xff] %v193_v20 }
  0x20   : > { %196 = vst [vmem:[%s1263_s30 + $0xa8] sm:$0xff] %v195_v21  ;;  %198 = vst [vmem:[%s1263_s30 + $0xb0] sm:$0xff] %v197_v22 }
  0x21   : > { %200 = vst [vmem:[%s1263_s30 + $0xb8] sm:$0xff] %v199_v23 }
  0x22 PF: > { %p1014_p10 = scmp.ge.s32.totalorder %s1176_s15, 1  ;;  %p205_p11 = scmp.lt.s32.totalorder %s1176_s15, 3 }
  0x24   : > { %p206_p12 = pnand %p1014_p10, %p205_p11 }
  0x25   : > { %s1310_s4 = sand.u32 (!%p206_p12), 1, %s1168_s13   ;;  %s1048_s26 = sshll.u32 (!%p206_p12), %s1008_s16, 6 }
  0x26   : > { %209 = sbr.rel (%p206_p12) target bundleno = 583 (0x247), region = 51  ;;  %s1015_s25 = sshll.u32 (!%p206_p12), %s1310_s4, 2 }
  0x27   : > { %s1050_s5 = smul.u32 (!%p206_p12), 192, %s1310_s4  ;;  %s234_s27 = scalar_lea.vmem (!%p206_p12), [#allocation3], %s1015_s25 }
  0x28   : > { %s944_s28 = sshll.u32 (!%p206_p12), %s234_s27, 4  ;;  %s1180_s8 = smov (!%p206_p12), [#allocation3]   ;;  %s945_s28 = int_to_ptr.vmem [resolvable:$true] %s944_s28 }
  0x29   : > { %s1315_s6 = scalar_lea.vmem (!%p206_p12), [#allocation2], %s1050_s5  ;;  %s942_s5 = scalar_lea.hbm (!%p206_p12), %s1637_s3, %s1048_s26 }
  0x2a   : > { %s1116_s7 = scalar_lea.vmem (!%p206_p12), %s945_s28, 64  ;;  %s1120_s16 = sshll.u32 (!%p206_p12), %s1180_s8, 4  ;;  %s1121_s16 = int_to_ptr.vmem [resolvable:$false] %s1120_s16 }
  0x2b   : > { %v1178_v24 = vmov 0.0   ;;  %v258_v25 = vld [vmem:[%s1315_s6 + $0xa8] sm:$0xff]  ;;  %v260_v26 = vld [vmem:[%s1315_s6 + $0xb8] sm:$0xff]  ;;  %v257_v27 = vld [vmem:[%s1315_s6 + $0xa0] sm:$0xff]  ;;  %vm266_vm0 = vcmask 392192   ;;  %v1638_v60 = vlaneseq  ;;  %vm532_vm1 = vcmask 523264   ;;  %p1117_p13 = scmp.ne.s32.totalorder %s945_s28, %s1116_s7  ;;  %p1123_p2 = scmp.lt.s32.totalorder %s945_s28, %s1121_s16 }
  0x2c   : > { %346 = vmatprep.mubr.f32.mxu0 %v1178_v24  ;;  %441 = vmatprep.mubr.f32.mxu1 %v1178_v24  ;;  %v259_v28 = vld [vmem:[%s1315_s6 + $0xb0] sm:$0xff]  ;;  %v254_v29 = vld [vmem:[%s1315_s6 + $0x88] sm:$0xff]  ;;  %v256_v30 = vld [vmem:[%s1315_s6 + $0x98] sm:$0xff]  ;;  %s1122_s9 = scalar_lea.vmem %s1121_s16, 128 }
  0x2d   : > { %302 = vmatprep.subr.mxu0 %v258_v25  ;;  %397 = vmatprep.subr.mxu1 %v260_v26  ;;  %v253_v31 = vld [vmem:[%s1315_s6 + $0x80] sm:$0xff]  ;;  %v255_v32 = vld [vmem:[%s1315_s6 + $0x90] sm:$0xff]  ;;  %v1326_v33 = vld [vmem:[%s1315_s6 + $0x68] sm:$0xff]  ;;  %v1437_v1 = vshrl.u32 %v1638_v60, 7  ;;  %p1118_p0 = pnand %p1117_p13, %p1239_p6  ;;  %p1124_p3 = scmp.lt.s32.totalorder %s1122_s9, %s1116_s7 }
  0x2e   : > { %303 = vmatpush1.msra.mxu0 %v257_v27  ;;  %398 = vmatpush1.msra.mxu1 %v259_v28  ;;  %v1329_v34 = vld [vmem:[%s1315_s6 + $0x78] sm:$0xff]  ;;  %v1332_v35 = vld [vmem:[%s1315_s6 + $0x60] sm:$0xff]  ;;  %v1335_v36 = vld [vmem:[%s1315_s6 + $0x70] sm:$0xff] }
  0x2f   : > { %304 = vmatprep.subr.mxu0 %v254_v29  ;;  %399 = vmatprep.subr.mxu1 %v256_v30  ;;  %v1338_v37 = vld [vmem:[%s1315_s6 + $0x48] sm:$0xff]  ;;  %v1341_v38 = vld [vmem:[%s1315_s6 + $0x58] sm:$0xff]  ;;  %v1346_v39 = vld [vmem:[%s1315_s6 + $0x40] sm:$0xff]  ;;  %v494_v7 = vsub.s32 2, %v1437_v1  ;;  %v478_v15 = vsub.s32 1, %v1437_v1  ;;  %p1119_p1 = pneg %p1118_p0  ;;  %p1125_p4 = por %p1124_p3, %p1123_p2 }
  0x30   : > { %305 = vmatpush1.msra.mxu0 %v253_v31  ;;  %400 = vmatpush1.msra.mxu1 %v255_v32  ;;  %v1349_v40 = vld [vmem:[%s1315_s6 + $0x50] sm:$0xff]  ;;  %v1354_v41 = vld [vmem:[%s1315_s6 + $0x28] sm:$0xff]  ;;  %v1357_v42 = vld [vmem:[%s1315_s6 + $0x38] sm:$0xff] }
  0x31   : > { %306 = vmatprep.subr.mxu0 %v1326_v33  ;;  %401 = vmatprep.subr.mxu1 %v1329_v34  ;;  %v1362_v43 = vld [vmem:[%s1315_s6 + $0x20] sm:$0xff]  ;;  %v1365_v44 = vld [vmem:[%s1315_s6 + $0x30] sm:$0xff]  ;;  %v1370_v45 = vld [vmem:[%s1315_s6 + $0x8] sm:$0xff]  ;;  %p1126_p5 = pnand %p1125_p4, %p1119_p1 }
  0x32   : > { %307 = vmatpush1.msra.mxu0 %v1332_v35  ;;  %402 = vmatpush1.msra.mxu1 %v1335_v36  ;;  %v1373_v46 = vld [vmem:[%s1315_s6 + $0x18] sm:$0xff]  ;;  %v1378_v47 = vld [vmem:[%s1315_s6] sm:$0xff]  ;;  %v1381_v48 = vld [vmem:[%s1315_s6 + $0x10] sm:$0xff]  ;;  %s930_s6 = scalar_lea.sflag [#allocation4], %s1310_s4 }
  0x33   : > { %308 = vmatprep.subr.mxu0 %v1338_v37  ;;  %403 = vmatprep.subr.mxu1 %v1341_v38  ;;  %v261_v49 = vld [vmem:[%s1635_s1] sm:$0xff]  ;;  %v262_v50 = vld [vmem:[%s1635_s1 + $0x8] sm:$0xff]  ;;  %v263_v51 = vld [vmem:[%s1635_s1 + $0x10] sm:$0xff] }
  0x34   : > { %309 = vmatpush1.msra.mxu0 %v1346_v39  ;;  %404 = vmatpush1.msra.mxu1 %v1349_v40  ;;  %v264_v52 = vld [vmem:[%s1635_s1 + $0x18] sm:$0xff]  ;;  %v265_v53 = vld [vmem:[%s1635_s1 + $0x20] sm:$0xff] }
  0x35   : > { %310 = vmatprep.subr.mxu0 %v1354_v41  ;;  %405 = vmatprep.subr.mxu1 %v1357_v42 }
  0x36   : > { %311 = vmatpush1.msra.mxu0 %v1362_v43  ;;  %406 = vmatpush1.msra.mxu1 %v1365_v44 }
  0x37   : > { %312 = vmatprep.subr.mxu0 %v1370_v45  ;;  %407 = vmatprep.subr.mxu1 %v1373_v46 }
  0x38   : > { %313 = vmatpush1.msra.mxu0 %v1378_v47  ;;  %408 = vmatpush1.msra.mxu1 %v1381_v48 }
  0x39   : > { %1016 = vmatmul.mubr.msk.f32.vlgmr.msra.gmra.mxu0 %vm266_vm0, %v261_v49  ;;  %1021 = vmatmul.mubr.msk.f32.vlgmr.msra.gmra.mxu1 %vm266_vm0, %v261_v49 }
  0x3a   : > { %352 = vmatprep.mubr.f32.mxu0 %v1178_v24  ;;  %447 = vmatprep.mubr.f32.mxu1 %v1178_v24 }
  0x3d   : > { %1017 = vmatmul.mubr.msk.f32.gmra.mxu0 %vm266_vm0, %v262_v50  ;;  %1022 = vmatmul.mubr.msk.f32.gmra.mxu1 %vm266_vm0, %v262_v50 }
  0x3e   : > { %358 = vmatprep.mubr.f32.mxu0 %v1178_v24  ;;  %453 = vmatprep.mubr.f32.mxu1 %v1178_v24 }
  0x41   : > { %1018 = vmatmul.mubr.msk.f32.gmra.mxu0 %vm266_vm0, %v263_v51  ;;  %1023 = vmatmul.mubr.msk.f32.gmra.mxu1 %vm266_vm0, %v263_v51 }
  0x42   : > { %364 = vmatprep.mubr.f32.mxu0 %v1178_v24  ;;  %459 = vmatprep.mubr.f32.mxu1 %v1178_v24 }
  0x45   : > { %1019 = vmatmul.mubr.msk.f32.gmra.mxu0 %vm266_vm0, %v264_v52  ;;  %1024 = vmatmul.mubr.msk.f32.gmra.mxu1 %vm266_vm0, %v264_v52 }
  0x46   : > { %370 = vmatprep.mubr.f32.mxu0 %v1178_v24  ;;  %465 = vmatprep.mubr.f32.mxu1 %v1178_v24 }
  0x49   : > { %1020 = vmatmul.mubr.msk.f32.gmra.mxu0 %vm266_vm0, %v265_v53  ;;  %1025 = vmatmul.mubr.msk.f32.gmra.mxu1 %vm266_vm0, %v265_v53 }
  0x4a   : > { %621 = vmatprep.mubr.f32.mxu0 %v1178_v24  ;;  %734 = vmatprep.mubr.f32.mxu1 %v1178_v24 }
  0xf9   : > { %v1424_v54 = vpop.f32.mrf.mxu0  ;;  %v1426_v55 = vpop.f32.mrf.mxu1 }
  0xfa   : > { %1092 = vrcp.f32 %v1424_v54 }
  0xfb   : > { %1094 = vrcp.f32 %v1426_v55  ;;  %v1430_v56 = vpop.f32.mrf.mxu0  ;;  %v1432_v57 = vpop.f32.mrf.mxu1 }
  0xfc   : > { %1096 = vrcp.f32 %v1430_v56 }
  0xfd   : > { %1098 = vrcp.f32 %v1432_v57  ;;  %v354_v58 = vpop.f32.mrf.mxu0  ;;  %v449_v59 = vpop.f32.mrf.mxu1 }
  0xff   : > { %v356_v61 = vpop.f32.mrf.mxu0  ;;  %v451_v62 = vpop.f32.mrf.mxu1 }
 0x101   : > { %v360_v63 = vpop.f32.mrf.mxu0  ;;  %v455_v0 = vpop.f32.mrf.mxu1 }
 0x103   : > { %v362_v2 = vpop.f32.mrf.mxu0  ;;  %v457_v3 = vpop.f32.mrf.mxu1 }
 0x105   : > { %v366_v4 = vpop.f32.mrf.mxu0  ;;  %v461_v5 = vpop.f32.mrf.mxu1 }
 0x107   : > { %v1093_v6 = vpop.eup %1092  ;;  %v368_v8 = vpop.f32.mrf.mxu0 }
 0x108   : > { %v463_v9 = vpop.f32.mrf.mxu1  ;;  %v1095_v10 = vpop.eup %1094  ;;  %v495_v16 = vrot.slane %v1093_v6, %v494_v7  ;;  %v479_v27 = vrot.slane %v1093_v6, %v478_v15 }
 0x109   : > { %v1097_v11 = vpop.eup %1096  ;;  %v372_v12 = vpop.f32.mrf.mxu0  ;;  %v503_v17 = vrot.slane %v1095_v10, %v494_v7  ;;  %v487_v28 = vrot.slane %v1095_v10, %v478_v15 }
 0x10a   : > { %v467_v13 = vpop.f32.mrf.mxu1  ;;  %v1099_v14 = vpop.eup %1098  ;;  %v499_v20 = vrot.slane %v1097_v11, %v494_v7  ;;  %v483_v22 = vrot.slane %v1097_v11, %v478_v15  ;;  %v1445_v29 = vmul.f32 %v495_v16, %v372_v12  ;;  %v1455_v49 = vmul.f32 %v495_v16, %v366_v4 }
 0x10b   : > { %v374_v18 = vpop.f32.mrf.mxu0  ;;  %v507_v21 = vrot.slane %v1099_v14, %v494_v7  ;;  %v491_v23 = vrot.slane %v1099_v14, %v478_v15  ;;  %v1447_v30 = vmul.f32 %v503_v17, %v467_v13  ;;  %v1457_v50 = vmul.f32 %v503_v17, %v461_v5  ;;  %v530_v7 = vld [vmem:[%s1636_s2 + $0x30] sm:$0xff] }
 0x10c   : > { %v469_v19 = vpop.f32.mrf.mxu1  ;;  %v1441_v25 = vmul.f32 %v499_v20, %v374_v18  ;;  %v1449_v31 = vmul.f32 %v499_v20, %v368_v8  ;;  %v1461_v51 = vmul.f32 %v483_v22, %v362_v2  ;;  %v1467_v53 = vmul.f32 %v479_v27, %v360_v63  ;;  %v528_v63 = vld [vmem:[%s1636_s2 + $0x20] sm:$0xff]  ;;  %v531_v8 = vld [vmem:[%s1636_s2 + $0x38] sm:$0xff] }
 0x10d   : > { %v1443_v26 = vmul.f32 %v507_v21, %v469_v19  ;;  %v1451_v32 = vmul.f32 %v507_v21, %v463_v9  ;;  %v1463_v52 = vmul.f32 %v491_v23, %v457_v3  ;;  %v1469_v6 = vmul.f32 %v487_v28, %v455_v0  ;;  %v529_v0 = vld [vmem:[%s1636_s2 + $0x28] sm:$0xff] }
 0x10e   : > { %573 = vmatprep.subr.mxu0 %v1441_v25  ;;  %v1473_v4 = vmul.f32 %v483_v22, %v356_v61  ;;  %v1475_v5 = vmul.f32 %v491_v23, %v451_v62  ;;  %v1479_v2 = vmul.f32 %v479_v27, %v354_v58  ;;  %v1481_v3 = vmul.f32 %v487_v28, %v449_v59  ;;  %v524_v58 = vld [vmem:[%s1636_s2] sm:$0xff]  ;;  %v525_v59 = vld [vmem:[%s1636_s2 + $0x8] sm:$0xff]  ;;  %v526_v61 = vld [vmem:[%s1636_s2 + $0x10] sm:$0xff] }
 0x10f   : > { %686 = vmatprep.subr.mxu1 %v1443_v26  ;;  %574 = vmatpush1.msra.mxu0 %v1445_v29  ;;  %v527_v62 = vld [vmem:[%s1636_s2 + $0x18] sm:$0xff] }
 0x110   : > { %687 = vmatpush1.msra.mxu1 %v1447_v30  ;;  %575 = vmatprep.subr.mxu0 %v1449_v31 }
 0x111   : > { %688 = vmatprep.subr.mxu1 %v1451_v32  ;;  %576 = vmatpush1.msra.mxu0 %v1455_v49 }
 0x112   : > { %689 = vmatpush1.msra.mxu1 %v1457_v50  ;;  %577 = vmatprep.subr.mxu0 %v1461_v51 }
 0x113   : > { %690 = vmatprep.subr.mxu1 %v1463_v52  ;;  %578 = vmatpush1.msra.mxu0 %v1467_v53 }
 0x114   : > { %691 = vmatpush1.msra.mxu1 %v1469_v6  ;;  %579 = vmatprep.subr.mxu0 %v1473_v4 }
 0x115   : > { %692 = vmatprep.subr.mxu1 %v1475_v5  ;;  %580 = vmatpush1.msra.mxu0 %v1479_v2 }
 0x116   : > { %693 = vmatpush1.msra.mxu1 %v1481_v3  ;;  %581 = vmatprep.subr.mxu0 %v1326_v33 }
 0x117   : > { %694 = vmatprep.subr.mxu1 %v1329_v34  ;;  %582 = vmatpush1.msra.mxu0 %v1332_v35 }
 0x118   : > { %695 = vmatpush1.msra.mxu1 %v1335_v36  ;;  %583 = vmatprep.subr.mxu0 %v1338_v37 }
 0x119   : > { %696 = vmatprep.subr.mxu1 %v1341_v38  ;;  %584 = vmatpush1.msra.mxu0 %v1346_v39 }
 0x11a   : > { %697 = vmatpush1.msra.mxu1 %v1349_v40  ;;  %585 = vmatprep.subr.mxu0 %v1354_v41 }
 0x11b   : > { %698 = vmatprep.subr.mxu1 %v1357_v42  ;;  %586 = vmatpush1.msra.mxu0 %v1362_v43 }
 0x11c   : > { %699 = vmatpush1.msra.mxu1 %v1365_v44  ;;  %587 = vmatprep.subr.mxu0 %v1370_v45 }
 0x11d   : > { %700 = vmatprep.subr.mxu1 %v1373_v46  ;;  %588 = vmatpush1.msra.mxu0 %v1378_v47 }
 0x11e   : > { %701 = vmatpush1.msra.mxu1 %v1381_v48  ;;  %1026 = vmatmul.mubr.msk.f32.vlgmr.msra.gmra.mxu0 %vm532_vm1, %v524_v58 }
 0x11f   : > { %1034 = vmatmul.mubr.msk.f32.vlgmr.msra.gmra.mxu1 %vm532_vm1, %v524_v58  ;;  %627 = vmatprep.mubr.f32.mxu0 %v1178_v24 }
 0x120   : > { %740 = vmatprep.mubr.f32.mxu1 %v1178_v24 }
 0x122   : > { %1027 = vmatmul.mubr.msk.f32.gmra.mxu0 %vm532_vm1, %v525_v59 }
 0x123   : > { %1035 = vmatmul.mubr.msk.f32.gmra.mxu1 %vm532_vm1, %v525_v59  ;;  %633 = vmatprep.mubr.f32.mxu0 %v1178_v24 }
 0x124   : > { %746 = vmatprep.mubr.f32.mxu1 %v1178_v24 }
 0x126   : > { %1028 = vmatmul.mubr.msk.f32.gmra.mxu0 %vm532_vm1, %v526_v61 }
 0x127   : > { %1036 = vmatmul.mubr.msk.f32.gmra.mxu1 %vm532_vm1, %v526_v61  ;;  %639 = vmatprep.mubr.f32.mxu0 %v1178_v24 }
 0x128   : > { %752 = vmatprep.mubr.f32.mxu1 %v1178_v24 }
 0x12a   : > { %1029 = vmatmul.mubr.msk.f32.gmra.mxu0 %vm532_vm1, %v527_v62 }
 0x12b   : > { %1037 = vmatmul.mubr.msk.f32.gmra.mxu1 %vm532_vm1, %v527_v62  ;;  %645 = vmatprep.mubr.f32.mxu0 %v1178_v24 }
 0x12c   : > { %758 = vmatprep.mubr.f32.mxu1 %v1178_v24 }
 0x12e   : > { %1030 = vmatmul.mubr.msk.f32.gmra.mxu0 %vm532_vm1, %v528_v63 }
 0x12f   : > { %1038 = vmatmul.mubr.msk.f32.gmra.mxu1 %vm532_vm1, %v528_v63  ;;  %651 = vmatprep.mubr.f32.mxu0 %v1178_v24 }
 0x130   : > { %764 = vmatprep.mubr.f32.mxu1 %v1178_v24 }
 0x132   : > { %1031 = vmatmul.mubr.msk.f32.gmra.mxu0 %vm532_vm1, %v529_v0 }
 0x133   : > { %1039 = vmatmul.mubr.msk.f32.gmra.mxu1 %vm532_vm1, %v529_v0  ;;  %657 = vmatprep.mubr.f32.mxu0 %v1178_v24 }
 0x134   : > { %770 = vmatprep.mubr.f32.mxu1 %v1178_v24 }
 0x136   : > { %1032 = vmatmul.mubr.msk.f32.gmra.mxu0 %vm532_vm1, %v530_v7 }
 0x137   : > { %1040 = vmatmul.mubr.msk.f32.gmra.mxu1 %vm532_vm1, %v530_v7  ;;  %663 = vmatprep.mubr.f32.mxu0 %v1178_v24 }
 0x138   : > { %776 = vmatprep.mubr.f32.mxu1 %v1178_v24 }
 0x13a   : > { %1033 = vmatmul.mubr.msk.f32.gmra.mxu0 %vm532_vm1, %v531_v8 }
 0x13b   : > { %1041 = vmatmul.mubr.msk.f32.gmra.mxu1 %vm532_vm1, %v531_v8 }
 0x1de   : > { %v623_v9 = vpop.f32.mrf.mxu0 }
 0x1df   : > { %v736_v10 = vpop.f32.mrf.mxu1  ;;  %v783_v63 = vmul.f32 %v623_v9, %v1378_v47 }
 0x1e0   : > { %v625_v11 = vpop.f32.mrf.mxu0  ;;  %v785_v0 = vmul.f32 %v736_v10, %v1381_v48 }
 0x1e1   : > { %v738_v12 = vpop.f32.mrf.mxu1  ;;  %v784_v60 = vmul.f32 %v625_v11, %v1370_v45 }
 0x1e2   : > { %v629_v13 = vpop.f32.mrf.mxu0 }
 0x1e3   : > { %v742_v14 = vpop.f32.mrf.mxu1  ;;  %v787_v27 = vmul.f32 %v629_v13, %v1362_v43  ;;  %v786_v43 = vmul.f32 %v738_v12, %v1373_v46 }
 0x1e4   : > { %v631_v15 = vpop.f32.mrf.mxu0  ;;  %v789_v28 = vmul.f32 %v742_v14, %v1365_v44 }
 0x1e5   : > { %v744_v16 = vpop.f32.mrf.mxu1  ;;  %v788_v58 = vmul.f32 %v631_v15, %v1354_v41  ;;  %v815_v14 = vadd.f32 %v787_v27, %v783_v63 }
 0x1e6   : > { %v635_v17 = vpop.f32.mrf.mxu0  ;;  %v790_v59 = vmul.f32 %v744_v16, %v1357_v42  ;;  %v841_v15 = vadd.f32 %v789_v28, %v785_v0 }
 0x1e7   : > { %v748_v18 = vpop.f32.mrf.mxu1  ;;  %v791_v7 = vmul.f32 %v635_v17, %v1346_v39  ;;  %v828_v9 = vadd.f32 %v788_v58, %v784_v60 }
 0x1e8   : > { %v637_v19 = vpop.f32.mrf.mxu0  ;;  %v793_v8 = vmul.f32 %v748_v18, %v1349_v40  ;;  %v854_v39 = vadd.f32 %v790_v59, %v786_v43 }
 0x1e9   : > { %v750_v24 = vpop.f32.mrf.mxu1  ;;  %v792_v44 = vmul.f32 %v637_v19, %v1338_v37  ;;  %v816_v11 = vadd.f32 %v815_v14, %v791_v7 }
 0x1ea   : > { %v641_v20 = vpop.f32.mrf.mxu0  ;;  %v794_v41 = vmul.f32 %v750_v24, %v1341_v38  ;;  %v842_v37 = vadd.f32 %v841_v15, %v793_v8 }
 0x1eb   : > { %v754_v21 = vpop.f32.mrf.mxu1  ;;  %v795_v47 = vmul.f32 %v641_v20, %v1332_v35  ;;  %v829_v16 = vadd.f32 %v828_v9, %v792_v44 }
 0x1ec   : > { %v643_v22 = vpop.f32.mrf.mxu0  ;;  %v797_v48 = vmul.f32 %v754_v21, %v1335_v36  ;;  %v855_v17 = vadd.f32 %v854_v39, %v794_v41 }
 0x1ed   : > { %v756_v23 = vpop.f32.mrf.mxu1  ;;  %v796_v40 = vmul.f32 %v643_v22, %v1326_v33  ;;  %v817_v19 = vadd.f32 %v816_v11, %v795_v47 }
 0x1ee   : > { %v647_v61 = vpop.f32.mrf.mxu0  ;;  %v798_v45 = vmul.f32 %v756_v23, %v1329_v34  ;;  %v843_v33 = vadd.f32 %v842_v37, %v797_v48 }
 0x1ef   : > { %v760_v62 = vpop.f32.mrf.mxu1  ;;  %v799_v38 = vmul.f32 %v647_v61, %v1479_v2  ;;  %v830_v20 = vadd.f32 %v829_v16, %v796_v40 }
 0x1f0   : > { %v649_v13 = vpop.f32.mrf.mxu0  ;;  %v801_v12 = vmul.f32 %v760_v62, %v1481_v3  ;;  %v856_v21 = vadd.f32 %v855_v17, %v798_v45 }
 0x1f1   : > { %v762_v42 = vpop.f32.mrf.mxu1  ;;  %v800_v35 = vmul.f32 %v649_v13, %v1473_v4  ;;  %v818_v27 = vadd.f32 %v817_v19, %v799_v38 }
 0x1f2   : > { %v653_v10 = vpop.f32.mrf.mxu0  ;;  %v802_v36 = vmul.f32 %v762_v42, %v1475_v5  ;;  %v844_v4 = vadd.f32 %v843_v33, %v801_v12 }
 0x1f3   : > { %v766_v46 = vpop.f32.mrf.mxu1  ;;  %v803_v34 = vmul.f32 %v653_v10, %v1467_v53  ;;  %v831_v58 = vadd.f32 %v830_v20, %v800_v35 }
 0x1f4   : > { %v655_v60 = vpop.f32.mrf.mxu0  ;;  %v805_v24 = vmul.f32 %v766_v46, %v1469_v6  ;;  %v857_v59 = vadd.f32 %v856_v21, %v802_v36 }
 0x1f5   : > { %v768_v18 = vpop.f32.mrf.mxu1  ;;  %v804_v2 = vmul.f32 %v655_v60, %v1461_v51  ;;  %v819_v62 = vadd.f32 %v818_v27, %v803_v34 }
 0x1f6   : > { %v806_v3 = vmul.f32 %v768_v18, %v1463_v52  ;;  %v659_v22 = vpop.f32.mrf.mxu0  ;;  %v845_v6 = vadd.f32 %v844_v4, %v805_v24 }
 0x1f7   : > { %v772_v23 = vpop.f32.mrf.mxu1  ;;  %v807_v5 = vmul.f32 %v659_v22, %v1455_v49  ;;  %v832_v0 = vadd.f32 %v831_v58, %v804_v2 }
 0x1f8   : > { %v809_v28 = vmul.f32 %v772_v23, %v1457_v50  ;;  %v661_v61 = vpop.f32.mrf.mxu0  ;;  %v858_v52 = vadd.f32 %v857_v59, %v806_v3 }
 0x1f9   : > { %v774_v53 = vpop.f32.mrf.mxu1  ;;  %v808_v63 = vmul.f32 %v661_v61, %v1449_v31  ;;  %v820_v43 = vadd.f32 %v819_v62, %v807_v5 }
 0x1fa   : > { %v810_v51 = vmul.f32 %v774_v53, %v1451_v32  ;;  %v665_v7 = vpop.f32.mrf.mxu0  ;;  %v846_v44 = vadd.f32 %v845_v6, %v809_v28 }
 0x1fb   : > { %v778_v8 = vpop.f32.mrf.mxu1  ;;  %v811_v49 = vmul.f32 %v665_v7, %v1445_v29  ;;  %v833_v41 = vadd.f32 %v832_v0, %v808_v63 }
 0x1fc   : > { %v813_v50 = vmul.f32 %v778_v8, %v1447_v30  ;;  %v859_v13 = vadd.f32 %v858_v52, %v810_v51  ;;  %v667_v42 = vpop.f32.mrf.mxu0  ;;  %v1179_v51 = vmov 1966171168  }
 0x1fd   : > { %v780_v14 = vpop.f32.mrf.mxu1  ;;  %v821_v15 = vadd.f32 %v820_v43, %v811_v49  ;;  %v812_v31 = vmul.f32 %v667_v42, %v1441_v25  ;;  %v902_v0 = vunpack.c.l.s4 %v1179_v51 }
 0x1fe   : > { %v847_v47 = vadd.f32 %v846_v44, %v813_v50  ;;  %v814_v32 = vmul.f32 %v780_v14, %v1443_v26 }
 0x1ff   : > { %v822_v48 = vrot.slane %v821_v15, 4  ;;  %v834_v39 = vadd.f32 %v833_v41, %v812_v31  ;;  %v903_v52 = vunpack.c.0.s8 %v902_v0 }
 0x200   : > { %v848_v9 = vrot.slane %v847_v47, 4  ;;  %v860_v40 = vadd.f32 %v859_v13, %v814_v32 }
 0x201   : > { %v823_v45 = vadd.f32 %v822_v48, %v821_v15  ;;  %v835_v46 = vrot.slane %v834_v39, 4  ;;  %v906_v43 = vsub.s32 %v903_v52, %v1437_v1  ;;  %v1642_v15 = vlaneseq }
 0x202   : > { %v849_v10 = vadd.f32 %v848_v9, %v847_v47  ;;  %v861_v29 = vrot.slane %v860_v40, 4 }
 0x203   : > { %v824_v11 = vrot.slane %v823_v45, 2  ;;  %v836_v37 = vadd.f32 %v835_v46, %v834_v39  ;;  %vm926_vm2 = vcmp.lt.s32.totalorder %v1642_v15, 512 }
 0x204   : > { %v850_v30 = vrot.slane %v849_v10, 2  ;;  %v862_v38 = vadd.f32 %v861_v29, %v860_v40 }
 0x205   : > { %v825_v12 = vadd.f32 %v824_v11, %v823_v45  ;;  %v837_v17 = vrot.slane %v836_v37, 2 }
 0x206   : > { %v851_v16 = vadd.f32 %v850_v30, %v849_v10  ;;  %v863_v35 = vrot.slane %v862_v38, 2 }
 0x207   : > { %v826_v36 = vrot.slane %v825_v12, 1  ;;  %v838_v60 = vadd.f32 %v837_v17, %v836_v37 }
 0x208   : > { %v852_v25 = vrot.slane %v851_v16, 1  ;;  %v864_v26 = vadd.f32 %v863_v35, %v862_v38 }
 0x209   : > { %v827_v18 = vadd.f32 %v826_v36, %v825_v12  ;;  %v839_v33 = vrot.slane %v838_v60, 1 }
 0x20a   : > { %v853_v19 = vadd.f32 %v852_v25, %v851_v16  ;;  %v865_v34 = vrot.slane %v864_v26, 1 }
 0x20b   : > { %v867_v24 = vadd.f32 %v827_v18, %v1424_v54  ;;  %v840_v21 = vadd.f32 %v839_v33, %v838_v60 }
 0x20c   : > { %v869_v20 = vadd.f32 %v853_v19, %v1426_v55  ;;  %v866_v2 = vadd.f32 %v865_v34, %v864_v26 }
 0x20d   : > { %v871_v3 = vsub.f32 0.0, %v867_v24  ;;  %v868_v23 = vadd.f32 %v840_v21, %v1430_v56 }
 0x20e   : > { %v873_v22 = vsub.f32 0.0, %v869_v20  ;;  %v870_v27 = vadd.f32 %v866_v2, %v1432_v57 }
 0x20f   : > { %v875_v4 = vmul.f32 1.442695, %v871_v3  ;;  %v872_v28 = vsub.f32 0.0, %v868_v23 }
 0x210   : > { %v879_v5 = vmul.f32 1.442695, %v873_v22  ;;  %v874_v58 = vsub.f32 0.0, %v870_v27 }
 0x211   : > { %1100 = vpow2.f32 %v875_v4  ;;  %v877_v59 = vmul.f32 1.442695, %v872_v28 }
 0x212   : > { %v881_v61 = vmul.f32 1.442695, %v874_v58  ;;  %1102 = vpow2.f32 %v879_v5 }
 0x213   : > { %1104 = vpow2.f32 %v877_v59 }
 0x214   : > { %1106 = vpow2.f32 %v881_v61 }
 0x21e   : > { %v1101_v54 = vpop.eup %1100 }
 0x21f   : > { %v1103_v55 = vpop.eup %1102  ;;  %v883_v53 = vadd.f32 1.0, %v1101_v54 }
 0x220   : > { %v1105_v62 = vpop.eup %1104  ;;  %v885_v6 = vadd.f32 1.0, %v1103_v55 }
 0x221   : > { %v1107_v63 = vpop.eup %1106  ;;  %1108 = vrcp.f32 %v883_v53  ;;  %v884_v56 = vadd.f32 1.0, %v1105_v62 }
 0x222   : > { %1110 = vrcp.f32 %v885_v6  ;;  %v886_v57 = vadd.f32 1.0, %v1107_v63 }
 0x223   : > { %1112 = vrcp.f32 %v884_v56 }
 0x224   : > { %1114 = vrcp.f32 %v886_v57 }
 0x22e   : > { %v1109_v7 = vpop.eup %1108 }
 0x22f   : > { %v1111_v8 = vpop.eup %1110 }
 0x230   : > { %v1113_v44 = vpop.eup %1112 }
 0x231   : > { %v1115_v49 = vpop.eup %1114  ;;  %v899_v50 = vcombine.low %v1109_v7, %v1113_v44 }
 0x232   : > { %v900_v41 = vcombine.low %v1111_v8, %v1115_v49 }
 0x233   : > { %v907_v13 = vrot.slane %v899_v50, %v906_v43 }
 0x234   : > { %v914_v42 = vrot.slane %v900_v41, %v906_v43 }
 0x236   : > { %v915_v14 = vcombine.low %v907_v13, %v914_v42 }
 0x238   : > { %v922_v47 = vrot.slane %v915_v14, %v906_v43 }
 0x23a   : > { %928 = vst.msk [vmem:[%s234_s27] sm:$0xf] %vm926_vm2, %v922_v47 }
 0x23b   : > { %1129 = shalt.err (!%p1126_p5)
}
 0x23c   : > { %s1130_s10 = scalar_lea.hbm %s942_s5, 64  ;;  %s1134_s17 = scalar_lea.hbm %s1637_s3, 128 }
 0x23d   : > { %p1131_p7 = scmp.ne.s32.totalorder %s942_s5, %s1130_s10  ;;  %p1135_p12 = scmp.lt.s32.totalorder %s942_s5, %s1637_s3 }
 0x23e   : > { %p1136_p13 = scmp.lt.s32.totalorder %s1134_s17, %s1130_s10 }
 0x23f   : > { %p1132_p10 = pnand %p1131_p7, %p1239_p6 }
 0x240   : > { %p1137_p0 = por %p1136_p13, %p1135_p12 }
 0x241   : > { %p1133_p11 = pneg %p1132_p10 }
 0x243   : > { %p1138_p9 = pnand %p1137_p0, %p1133_p11 }
 0x245   : > { %1141 = shalt.err (!%p1138_p9)
}
 0x246   : > { %1051 = dma.vmem_to_hbm [thread:$0]  (%p1239_p6), %s945_s28, 64, %s942_s5, %s930_s6  }
 0x247 PF: > { %s956_s24 = sand.u32 1, %s1164_s12   ;;  %p1643_p1 = scmp.ge.s32.totalorder %s1176_s15, 2 }
 0x248   : > { %s957_s25 = scalar_lea.sflag [#allocation4], %s956_s24 }
 0x249   : > { %p1054_p2 = pnand %p1643_p1, %p1243_p8 }
 0x24b   : > { %p1055_p3 = pneg %p1054_p2 }
 0x24d   : > { %1159 = dma.done.wait (%p1055_p3), %s957_s25, 64  }
 0x24e   : > { %1161 = vsyncadd (%p1055_p3), %s957_s25, 4294967232  ;;  %p13_p9 = scmp.ge.s32.totalorder %s1224_s18, 4   ;;  %s1644_s12 = smov %s1168_s13 }
 0x24f   : > { %s1645_s13 = smov %s1172_s14  ;;  %s1646_s14 = smov %s1237_s21 }
 0x250   : > { %s1647_s15 = smov %s1224_s18  ;;  %15 = sbr.rel (!%p13_p9) target bundleno = 3 (0x3), region = 95 }
 0x255   :  { %962 = vsyncpa [#allocation4], 1 }
 0x256   :  { %964 = vsyncpa [#allocation4 + $0x1], 1 }

</bundles_post_ra>
